<compile_context>
chip_gen: v5e
topology: v5e:2x2
jax: 0.10.0
libtpu: 0.0.40
codegen_flags: <defaults>
</compile_context>

<pallas_src>
import math

import jax
import jax.numpy as jnp
from jax.experimental import pallas as pl
from jax.experimental.pallas import tpu as pltpu

LANE = 128       # lane width
ROW_ALIGN = 16   # sublane alignment safe for both f32 (8) and bf16 (16) tiles


def _round_up(n, m):
    return ((n + m - 1) // m) * m


# ------------------------------ fused FFN kernel -----------------------------
def _ffn_kernel(x_ref, w1_ref, b1_ref, w2_ref, b2_ref, o_ref, acc_ref):
    # Grid: (row tiles i [parallel], d_ff tiles k [arbitrary, last]).
    #   x_ref : (tm, Dp)  compute dtype (bf16), resident across k (index_map (i, 0))
    #   w1_ref: (Dp, tk)  compute dtype, streamed over k
    #   b1_ref: (1,  tk)  f32, streamed over k
    #   w2_ref: (tk, Dp)  compute dtype, streamed over k
    #   b2_ref: (1,  Dp)  f32, resident
    #   o_ref : (tm, Dp)  out dtype, written once at k == last
    #   acc_ref: (tm, Dp) f32 VMEM scratch accumulator (persists across k)
    k = pl.program_id(1)

    @pl.when(k == 0)
    def _():
        acc_ref[...] = jnp.zeros_like(acc_ref)

    # linear_1 (this d_ff slice) on the MXU with f32 accumulation, bias + ReLU in f32.
    h = jnp.dot(x_ref[...], w1_ref[...], preferred_element_type=jnp.float32)
    h = jnp.maximum(h + b1_ref[...], 0.0)
    # dropout: identity (eval mode).
    # linear_2 partial product for this d_ff slice, accumulated in f32.
    acc_ref[...] += jnp.dot(h.astype(w2_ref.dtype), w2_ref[...],
                            preferred_element_type=jnp.float32)

    @pl.when(k == pl.num_programs(1) - 1)
    def _():
        o_ref[...] = (acc_ref[...] + b2_ref[...]).astype(o_ref.dtype)


# ---------------------- one-time parameter preparation ------------------------
def prepare_ffn_params(params, *, compute_dtype=jnp.bfloat16):
    """Do once at parameter-load time (NOT per forward call):
    transpose weights to (Din, Dout), zero-pad d_model / d_ff to 128-multiples
    (lane-dense, full-width MXU tiles), cast weights to the MXU compute dtype.
    Biases stay f32.  Zero padding is exact: padded d_ff columns give
    relu(0 + 0) = 0 and padded W2 rows are 0, so they contribute nothing."""
    w1, b1, w2, b2 = params["w1"], params["b1"], params["w2"], params["b2"]
    d_ff, d_model = w1.shape
    Dp = _round_up(d_model, LANE)
    Fp = _round_up(d_ff, LANE)

    w1t = jnp.zeros((Dp, Fp), compute_dtype).at[:d_model, :d_ff].set(
        w1.T.astype(compute_dtype))
    w2t = jnp.zeros((Fp, Dp), compute_dtype).at[:d_ff, :d_model].set(
        w2.T.astype(compute_dtype))
    b1p = jnp.zeros((1, Fp), jnp.float32).at[:, :d_ff].set(b1.astype(jnp.float32))
    b2p = jnp.zeros((1, Dp), jnp.float32).at[:, :d_model].set(b2.astype(jnp.float32))
    return {"w1t": w1t, "b1": b1p, "w2t": w2t, "b2": b2p,
            "d_model": d_model, "d_ff": d_ff, "compute_dtype": compute_dtype}


# --------------------------------- wrapper ------------------------------------
def feed_forward(x, prep, *, tm=256, tk=512):
    """x: (B, S, d_model) -> (B, S, d_model). Fused linear -> ReLU -> linear."""
    B, S, D = x.shape
    assert D == prep["d_model"]
    cdt = prep["compute_dtype"]
    w1t, b1, w2t, b2 = prep["w1t"], prep["b1"], prep["w2t"], prep["b2"]
    Dp, Fp = w1t.shape
    out_dtype = x.dtype

    M = B * S

    # Row tile: 16-aligned, no larger than the (aligned) problem.
    tm = max(ROW_ALIGN, min(tm, _round_up(M, ROW_ALIGN)))
    tm = (tm // ROW_ALIGN) * ROW_ALIGN
    # Give both v7x TensorCores work on the "parallel" row axis if possible.
    if _round_up(M, tm) // tm == 1 and tm > ROW_ALIGN:
        tm = max(ROW_ALIGN, ((tm // 2) // ROW_ALIGN) * ROW_ALIGN)
    Mp = _round_up(M, tm)

    # d_ff tile: 128-aligned divisor of the padded d_ff (no ragged K blocks).
    tk = max(LANE, (min(tk, Fp) // LANE) * LANE)
    while Fp % tk:
        tk -= LANE

    grid = (Mp // tm, Fp // tk)

    # Pad + cast activations (zeros in padded rows/cols are exact; padded rows
    # produce garbage-free values that are sliced away below).
    x2 = jnp.zeros((Mp, Dp), cdt).at[:M, :D].set(x.reshape(M, D).astype(cdt))

    cd_size = jnp.dtype(cdt).itemsize
    out_size = jnp.dtype(out_dtype).itemsize
    n_row_tiles = grid[0]

    cost = pl.CostEstimate(
        flops=2 * M * D * prep["d_ff"] + 2 * M * prep["d_ff"] * D,   # two GEMMs
        transcendentals=0,
        bytes_accessed=(
            Mp * Dp * cd_size                              # x streamed once
            + Mp * Dp * out_size                           # output written once
            + n_row_tiles * (w1t.size + w2t.size) * cd_size  # weights per row tile
            + n_row_tiles * (b1.size + b2.size) * 4          # biases per row tile
        ),
    )

    # Rough per-step VMEM (double-buffered inputs/output + f32 accumulator).
    vmem_bytes = (
        2 * (tm * Dp * cd_size            # x tile
             + Dp * tk * cd_size          # W1^T tile
             + tk * 4 + Dp * 4            # b1, b2 tiles
             + tk * Dp * cd_size          # W2^T tile
             + tm * Dp * out_size)        # output tile
        + tm * Dp * 4                     # accumulator scratch
    )
    vmem_limit = min(64 << 20, max(32 << 20, int(1.5 * vmem_bytes) + (8 << 20)))

    out = pl.pallas_call(
        _ffn_kernel,
        grid=grid,
        in_specs=[
            pl.BlockSpec((tm, Dp), lambda i, k: (i, 0)),   # x tile, resident over k
            pl.BlockSpec((Dp, tk), lambda i, k: (0, k)),   # W1^T slice (streamed)
            pl.BlockSpec((1, tk),  lambda i, k: (0, k)),   # b1 slice
            pl.BlockSpec((tk, Dp), lambda i, k: (k, 0)),   # W2^T slice (streamed)
            pl.BlockSpec((1, Dp),  lambda i, k: (0, 0)),   # b2 (resident)
        ],
        out_specs=pl.BlockSpec((tm, Dp), lambda i, k: (i, 0)),  # lane-dense output
        out_shape=jax.ShapeDtypeStruct((Mp, Dp), out_dtype),
        scratch_shapes=[pltpu.VMEM((tm, Dp), jnp.float32)],
        compiler_params=pltpu.CompilerParams(
            dimension_semantics=("parallel", "arbitrary"),
            vmem_limit_bytes=vmem_limit,
        ),
        cost_estimate=cost,
    )(x2, w1t, b1, w2t, b2)

    return out[:M, :D].reshape(B, S, D)


# ----------------------------- references (pure JAX) ---------------------------
def feed_forward_ref_f32(x, params):
    h = x @ params["w1"].T + params["b1"]
    h = jnp.maximum(h, 0.0)
    return h @ params["w2"].T + params["b2"]


def feed_forward_ref_mixed(x, prep):
    """Mimics the kernel numerics: bf16 MXU inputs, f32 accumulation."""
    D = prep["d_model"]
    cdt = prep["compute_dtype"]
    xc = x.astype(cdt)
    h = jnp.dot(xc, prep["w1t"][:D, :], preferred_element_type=jnp.float32)
    h = jnp.maximum(h + prep["b1"], 0.0)
    y = jnp.dot(h.astype(cdt), prep["w2t"][:, :D],
                preferred_element_type=jnp.float32)
    return y + prep["b2"][:, :D]


if __name__ == "__main__":
    D_MODEL, D_FF = 32, 128
    key = jax.random.PRNGKey(0)
    kx, kw1, kb1, kw2, kb2, kx2 = jax.random.split(key, 6)

    # PyTorch nn.Linear default init: U(-1/sqrt(fan_in), 1/sqrt(fan_in))
    bound1 = 1.0 / math.sqrt(D_MODEL)
    bound2 = 1.0 / math.sqrt(D_FF)
    params = {
        "w1": jax.random.uniform(kw1, (D_FF, D_MODEL), jnp.float32, -bound1, bound1),
        "b1": jax.random.uniform(kb1, (D_FF,), jnp.float32, -bound1, bound1),
        "w2": jax.random.uniform(kw2, (D_MODEL, D_FF), jnp.float32, -bound2, bound2),
        "b2": jax.random.uniform(kb2, (D_MODEL,), jnp.float32, -bound2, bound2),
    }

    # One-time prep (transpose / pad / cast) — parameter-load time, not per call.
    prep = prepare_ffn_params(params, compute_dtype=jnp.bfloat16)

    # Case 1: nicely shaped (B=2, S=8).
    x = jax.random.normal(kx, (2, 8, D_MODEL), dtype=jnp.float32)
    out = jax.block_until_ready(feed_forward(x, prep))
    assert out.shape == x.shape
    ref_mix = feed_forward_ref_mixed(x.reshape(-1, D_MODEL), prep).reshape(x.shape)
    ref_f32 = feed_forward_ref_f32(x, params)
    assert jnp.allclose(out, ref_mix, atol=2e-3, rtol=2e-3), "mismatch vs mixed-precision reference"
    assert jnp.allclose(out, ref_f32, atol=5e-2, rtol=5e-2), "mismatch vs f32 reference"

    # Case 2: ragged row count (M = 18, not a multiple of the row tile).
    x_r = jax.random.normal(kx2, (2, 9, D_MODEL), dtype=jnp.float32)
    out_r = jax.block_until_ready(feed_forward(x_r, prep))
    ref_mix_r = feed_forward_ref_mixed(x_r.reshape(-1, D_MODEL), prep).reshape(x_r.shape)
    assert out_r.shape == x_r.shape
    assert jnp.allclose(out_r, ref_mix_r, atol=2e-3, rtol=2e-3), "ragged-M mismatch"

    print("KERNEL_OK")
</pallas_src>

<mosaic_0001>
module attributes {stable_mosaic.version = 11 : i64} {
  func.func @_ffn_kernel(%arg0: i32, %arg1: i32, %arg2: memref<16x128xbf16, #tpu.memory_space<vmem>>, %arg3: memref<128x128xbf16, #tpu.memory_space<vmem>>, %arg4: memref<1x128xf32, #tpu.memory_space<vmem>>, %arg5: memref<128x128xbf16, #tpu.memory_space<vmem>>, %arg6: memref<1x128xf32, #tpu.memory_space<vmem>>, %arg7: memref<16x128xf32, #tpu.memory_space<vmem>>, %arg8: memref<16x128xf32, #tpu.memory_space<vmem>>) attributes {dimension_semantics = [#tpu.dimension_semantics<parallel>, #tpu.dimension_semantics<arbitrary>], iteration_bounds = array<i64: 1, 1>, scalar_prefetch = 0 : i64, scratch_operands = 1 : i64, tpu.core_type = #tpu.core_type<tc>, window_params = [{transform_indices = @transform_0, window_bounds = array<i64: 16, 128>}, {transform_indices = @transform_1, window_bounds = array<i64: 128, 128>}, {transform_indices = @transform_2, window_bounds = array<i64: 1, 128>}, {transform_indices = @transform_3, window_bounds = array<i64: 128, 128>}, {pipeline_mode = #tpu.pipeline_mode<synchronous>, transform_indices = @transform_4, window_bounds = array<i64: 1, 128>}, {transform_indices = @transform_5, window_bounds = array<i64: 16, 128>}]} {
    %c0_i32 = arith.constant 0 : i32
    %0 = arith.cmpi eq, %arg1, %c0_i32 : i32
    %1 = arith.extui %0 : i1 to i32
    %c0_i32_0 = arith.constant 0 : i32
    %2 = arith.cmpi ne, %1, %c0_i32_0 : i32
    scf.if %2 {
      %cst_16 = arith.constant 0.000000e+00 : f32
      %20 = vector.broadcast %cst_16 : f32 to vector<16x128xf32>
      %c0_17 = arith.constant 0 : index
      %c0_18 = arith.constant 0 : index
      %21 = vector.load %arg8[%c0_17, %c0_18] : memref<16x128xf32, #tpu.memory_space<vmem>>, vector<16x128xf32>
      tpu.vector_store %arg8[%c0_17, %c0_18], %20 {strides = array<i32>} : memref<16x128xf32, #tpu.memory_space<vmem>>, vector<16x128xf32>,
    } else {
    }
    %c0 = arith.constant 0 : index
    %c0_1 = arith.constant 0 : index
    %3 = vector.load %arg2[%c0, %c0_1] : memref<16x128xbf16, #tpu.memory_space<vmem>>, vector<16x128xbf16>
    %c0_2 = arith.constant 0 : index
    %c0_3 = arith.constant 0 : index
    %4 = vector.load %arg3[%c0_2, %c0_3] : memref<128x128xbf16, #tpu.memory_space<vmem>>, vector<128x128xbf16>
    %cst = arith.constant dense<0.000000e+00> : vector<16x128xf32>
    %5 = tpu.matmul %3, %4, %cst {dimension_numbers = #tpu.dot_dimension_numbers<[1], [0], [0], [1], [0, 0, 1, 1], [], []>} : vector<16x128xbf16>, vector<128x128xbf16>, vector<16x128xf32> -> vector<16x128xf32>
    %c0_4 = arith.constant 0 : index
    %c0_5 = arith.constant 0 : index
    %6 = vector.load %arg4[%c0_4, %c0_5] : memref<1x128xf32, #tpu.memory_space<vmem>>, vector<1x128xf32>
    %7 = vector.broadcast %6 : vector<1x128xf32> to vector<16x128xf32>
    %8 = arith.addf %5, %7 : vector<16x128xf32>
    %cst_6 = arith.constant 0.000000e+00 : f32
    %9 = vector.broadcast %cst_6 : f32 to vector<16x128xf32>
    %10 = arith.maximumf %8, %9 : vector<16x128xf32>
    %c0_7 = arith.constant 0 : index
    %c0_8 = arith.constant 0 : index
    %11 = vector.load %arg8[%c0_7, %c0_8] : memref<16x128xf32, #tpu.memory_space<vmem>>, vector<16x128xf32>
    %12 = arith.truncf %10 : vector<16x128xf32> to vector<16x128xbf16>
    %c0_9 = arith.constant 0 : index
    %c0_10 = arith.constant 0 : index
    %13 = vector.load %arg5[%c0_9, %c0_10] : memref<128x128xbf16, #tpu.memory_space<vmem>>, vector<128x128xbf16>
    %cst_11 = arith.constant dense<0.000000e+00> : vector<16x128xf32>
    %14 = tpu.matmul %12, %13, %cst_11 {dimension_numbers = #tpu.dot_dimension_numbers<[1], [0], [0], [1], [0, 0, 1, 1], [], []>} : vector<16x128xbf16>, vector<128x128xbf16>, vector<16x128xf32> -> vector<16x128xf32>
    %15 = arith.addf %11, %14 : vector<16x128xf32>
    %c0_12 = arith.constant 0 : index
    %c0_13 = arith.constant 0 : index
    %16 = vector.load %arg8[%c0_12, %c0_13] : memref<16x128xf32, #tpu.memory_space<vmem>>, vector<16x128xf32>
    tpu.vector_store %arg8[%c0_12, %c0_13], %15 {strides = array<i32>} : memref<16x128xf32, #tpu.memory_space<vmem>>, vector<16x128xf32>,
    %c0_i32_14 = arith.constant 0 : i32
    %17 = arith.cmpi eq, %arg1, %c0_i32_14 : i32
    %18 = arith.extui %17 : i1 to i32
    %c0_i32_15 = arith.constant 0 : i32
    %19 = arith.cmpi ne, %18, %c0_i32_15 : i32
    scf.if %19 {
      %c0_16 = arith.constant 0 : index
      %c0_17 = arith.constant 0 : index
      %20 = vector.load %arg8[%c0_16, %c0_17] : memref<16x128xf32, #tpu.memory_space<vmem>>, vector<16x128xf32>
      %c0_18 = arith.constant 0 : index
      %c0_19 = arith.constant 0 : index
      %21 = vector.load %arg6[%c0_18, %c0_19] : memref<1x128xf32, #tpu.memory_space<vmem>>, vector<1x128xf32>
      %22 = vector.broadcast %21 : vector<1x128xf32> to vector<16x128xf32>
      %23 = arith.addf %20, %22 : vector<16x128xf32>
      %c0_20 = arith.constant 0 : index
      %c0_21 = arith.constant 0 : index
      %24 = vector.load %arg7[%c0_20, %c0_21] : memref<16x128xf32, #tpu.memory_space<vmem>>, vector<16x128xf32>
      tpu.vector_store %arg7[%c0_20, %c0_21], %23 {strides = array<i32>} : memref<16x128xf32, #tpu.memory_space<vmem>>, vector<16x128xf32>,
    } else {
    }
    return
  }
  func.func @transform_0(%arg0: i32, %arg1: i32) -> (i32, i32) {
    %c0_i32 = arith.constant 0 : i32
    %c0_i32_0 = arith.constant 0 : i32
    return %arg0, %c0_i32 : i32, i32
  }
  func.func @transform_1(%arg0: i32, %arg1: i32) -> (i32, i32) {
    %c0_i32 = arith.constant 0 : i32
    %c0_i32_0 = arith.constant 0 : i32
    return %c0_i32, %arg1 : i32, i32
  }
  func.func @transform_2(%arg0: i32, %arg1: i32) -> (i32, i32) {
    %c0_i32 = arith.constant 0 : i32
    %c0_i32_0 = arith.constant 0 : i32
    return %c0_i32, %arg1 : i32, i32
  }
  func.func @transform_3(%arg0: i32, %arg1: i32) -> (i32, i32) {
    %c0_i32 = arith.constant 0 : i32
    %c0_i32_0 = arith.constant 0 : i32
    return %arg1, %c0_i32 : i32, i32
  }
  func.func @transform_4(%arg0: i32, %arg1: i32) -> (i32, i32) {
    %c0_i32 = arith.constant 0 : i32
    %c0_i32_0 = arith.constant 0 : i32
    %c0_i32_1 = arith.constant 0 : i32
    return %c0_i32, %c0_i32_0 : i32, i32
  }
  func.func @transform_5(%arg0: i32, %arg1: i32) -> (i32, i32) {
    %c0_i32 = arith.constant 0 : i32
    %c0_i32_0 = arith.constant 0 : i32
    return %arg0, %c0_i32 : i32, i32
  }
}

</mosaic_0001>

<bundles_post_ra>
// kernel: tpu_custom_call.1
= control target key start
LH: loop header
LB: loop body
LE: loop exit
PB: predicated region body
PF: predicated region fallthrough
CT: control target
= control target key end

     0   :  { %10 = vsyncpa [#allocation4], 0  ;;  %s537_s0 = inlined_call_operand.hbm [shape: bf16[16,128], index: 0, kind: input, shape index: {}]   ;;  %s538_s1 = inlined_call_operand.hbm [shape: bf16[128,128], index: 1, kind: input, shape index: {}]   ;;  %s539_s2 = inlined_call_operand.vmem [shape: f32[1,128], index: 2, kind: input, shape index: {}]   ;;  %s540_s3 = inlined_call_operand.hbm [shape: bf16[128,128], index: 3, kind: input, shape index: {}]   ;;  %s541_s4 = inlined_call_operand.vmem [shape: f32[1,128], index: 4, kind: input, shape index: {}]   ;;  %s542_s5 = inlined_call_operand.hbm [shape: f32[16,128], index: 5, kind: output, shape index: {}]  }
   0x1   :  { %11 = vsyncpa [#allocation7], 0 }
   0x2   :  { %12 = vsyncpa [#allocation5], 0  ;;  %s30_s20 = sshll.u32 %s538_s1, 4  ;;  %s481_s21 = smov [#allocation6]   ;;  %s31_s20 = int_to_ptr.hbm [resolvable:$true] %s30_s20 }
   0x3   :  { %s32_s22 = sshll.u32 %s481_s21, 4  ;;  %s17_s25 = sshll.u32 %s537_s0, 4  ;;  %s33_s22 = int_to_ptr.vmem [resolvable:$true] %s32_s22  ;;  %s18_s25 = int_to_ptr.hbm [resolvable:$true] %s17_s25 }
   0x4   :  { %s482_s26 = smov 64   ;;  %s483_s27 = smov 4  }
   0x5   :  { %38 = dma.hbm_to_vmem [thread:$0]  %s31_s20, 1024, %s33_s22, [#allocation7], %s482_s26, %s482_s26, %s483_s27  }
   0x6   :  { %s484_s28 = smov [#allocation3]   ;;  %s45_s7 = sshll.u32 %s540_s3, 4  ;;  %s46_s7 = int_to_ptr.hbm [resolvable:$true] %s45_s7 }
   0x7   :  { %s19_s29 = sshll.u32 %s484_s28, 4  ;;  %s485_s1 = smov [#allocation8]   ;;  %s20_s29 = int_to_ptr.vmem [resolvable:$true] %s19_s29 }
   0x8   :  { %25 = dma.hbm_to_vmem [thread:$0]  %s18_s25, 128, %s20_s29, [#allocation4], %s482_s26, %s482_s26, %s483_s27  }
   0x9   :  { %s47_s8 = sshll.u32 %s485_s1, 4  ;;  %s48_s8 = int_to_ptr.vmem [resolvable:$true] %s47_s8 }
   0xa   :  { %53 = dma.hbm_to_vmem [thread:$0]  %s46_s7, 1024, %s48_s8, [#allocation7], %s482_s26, %s482_s26, %s483_s27  }
   0xb   :  { %475 = dma.done.wait [#allocation4], 128  }
   0xc   :  { %476 = vsyncadd [#allocation4], 4294967168 }
   0xd   :  { %477 = dma.done.wait [#allocation7], 2048  }
   0xe   :  { %478 = vsyncadd [#allocation7], 4294965248  ;;  %v360_v0 = vld [vmem:[#allocation6 + $0x38] sm:$0xff]  ;;  %v359_v1 = vld [vmem:[#allocation6 + $0x30] sm:$0xff]  ;;  %s486_s11 = smov [#allocation9]   ;;  %s487_s15 = smov 128  }
   0xf   :  { %150 = vmatpush.bf16.msra.mxu0 %v360_v0  ;;  %v368_v2 = vld [vmem:[#allocation8 + $0x38] sm:$0xff]  ;;  %v367_v3 = vld [vmem:[#allocation8 + $0x30] sm:$0xff]  ;;  %v358_v4 = vld [vmem:[#allocation6 + $0x28] sm:$0xff]  ;;  %s268_s12 = sshll.u32 %s486_s11, 4  ;;  %s488_s16 = smov 8   ;;  %s269_s12 = int_to_ptr.vmem [resolvable:$true] %s268_s12 }
  0x10   :  { %233 = vmatpush.bf16.msra.mxu1 %v368_v2  ;;  %v366_v5 = vld [vmem:[#allocation8 + $0x28] sm:$0xff]  ;;  %v357_v6 = vld [vmem:[#allocation6 + $0x20] sm:$0xff]  ;;  %v356_v8 = vld [vmem:[#allocation6 + $0x18] sm:$0xff] }
  0x11   :  { %v365_v7 = vld [vmem:[#allocation8 + $0x20] sm:$0xff]  ;;  %v355_v9 = vld [vmem:[#allocation6 + $0x10] sm:$0xff]  ;;  %v354_v10 = vld [vmem:[#allocation6 + $0x8] sm:$0xff] }
  0x12   :  { %v353_v11 = vld [vmem:[#allocation6] sm:$0xff]  ;;  %v352_v12 = vld [vmem:[#allocation3] sm:$0xff]  ;;  %v363_v14 = vld [vmem:[#allocation8 + $0x10] sm:$0xff] }
  0x13   :  { %151 = vmatpush.bf16.msra.mxu0 %v359_v1  ;;  %v364_v13 = vld [vmem:[#allocation8 + $0x18] sm:$0xff]  ;;  %v362_v15 = vld [vmem:[#allocation8 + $0x8] sm:$0xff]  ;;  %v361_v16 = vld [vmem:[#allocation8] sm:$0xff] }
  0x14   :  { %234 = vmatpush.bf16.msra.mxu1 %v367_v3  ;;  %v377_v18 = vld [vmem:[%s539_s2] ss:$0 sm:$0xff]  ;;  %s270_s2 = sshll.u32 %s542_s5, 4  ;;  %s271_s2 = int_to_ptr.hbm [resolvable:$true] %s270_s2 }
  0x15   :  { %v378_v25 = vld [vmem:[%s541_s4] ss:$0 sm:$0xff] }
  0x17   :  { %152 = vmatpush.bf16.msra.mxu0 %v358_v4 }
  0x18   :  { %235 = vmatpush.bf16.msra.mxu1 %v366_v5 }
  0x1b   :  { %153 = vmatpush.bf16.msra.mxu0 %v357_v6 }
  0x1c   :  { %236 = vmatpush.bf16.msra.mxu1 %v365_v7 }
  0x1f   :  { %154 = vmatpush.bf16.msra.mxu0 %v356_v8 }
  0x20   :  { %237 = vmatpush.bf16.msra.mxu1 %v364_v13 }
  0x23   :  { %155 = vmatpush.bf16.msra.mxu0 %v355_v9 }
  0x24   :  { %238 = vmatpush.bf16.msra.mxu1 %v363_v14 }
  0x27   :  { %156 = vmatpush.bf16.msra.mxu0 %v354_v10 }
  0x28   :  { %239 = vmatpush.bf16.msra.mxu1 %v362_v15 }
  0x2b   :  { %157 = vmatpush.bf16.msra.mxu0 %v353_v11 }
  0x2c   :  { %240 = vmatpush.bf16.msra.mxu1 %v361_v16 }
  0x2e   :  { %158 = vmatmul.bf16.vlgmr.msra.gmra.mxu0 %v352_v12 }
  0xab   :  { %v159_v17 = vpop.f32.mrf.mxu0 }
  0xac   :  { %v160_v19 = vadd.f32 %v377_v18, %v159_v17 }
  0xae   :  { %v164_v22 = vmax.f32 %v160_v19, 0.0 }
  0xb3   :  { %v161_v20 = vpop.f32.mrf.mxu0 }
  0xb4   :  { %v162_v21 = vadd.f32 %v377_v18, %v161_v20 }
  0xb6   :  { %v165_v23 = vmax.f32 %v162_v21, 0.0 }
  0xb8   :  { %v168_v24 = vpack.c.bf16 %v165_v23, %v164_v22 }
  0xba   :  { %241 = vmatmul.bf16.vlgmr.msra.gmra.mxu1 %v168_v24 }
 0x137   :  { %v242_v26 = vpop.f32.mrf.mxu1 }
 0x138   :  { %v260_v27 = vadd.f32 %v378_v25, %v242_v26 }
 0x13a   :  { %262 = vst [vmem:[#allocation9] sm:$0xff] %v260_v27 }
 0x13f   :  { %v244_v28 = vpop.f32.mrf.mxu1 }
 0x140   :  { %v261_v29 = vadd.f32 %v378_v25, %v244_v28 }
 0x142   :  { %263 = vst [vmem:[#allocation9 + $0x8] sm:$0xff] %v261_v29 }
 0x143   :  { %276 = dma.vmem_to_hbm [thread:$0]  %s269_s12, 256, %s271_s2, [#allocation5], %s487_s15, %s487_s15, %s488_s16  }
 0x144   :  { %479 = dma.done.wait [#allocation5], 256  }
 0x145   :  { %480 = vsyncadd [#allocation5], 4294967040 }
 0x146   :  { %281 = vsyncpa [#allocation4], 1 }
 0x147   :  { %282 = vsyncpa [#allocation7], 1 }
 0x148   :  { %283 = vsyncpa [#allocation5], 1 }

</bundles_post_ra>
